<compile_context>
chip_gen: v7x
topology: tpu7x:2x2x1
jax: 0.10.0
libtpu: 0.0.40
codegen_flags: <defaults>
</compile_context>

<pallas_src>
import numpy as np
import jax
import jax.numpy as jnp
from jax import lax
from jax.experimental import pallas as pl
from jax.experimental.pallas import tpu as pltpu


def _round_up(x: int, m: int) -> int:
    return ((x + m - 1) // m) * m


# ------------------------- Pallas kernels -------------------------

def _row_panel_kernel(adj_ref, emb_ref, out_ref):
    """One (tm, Dp) output panel of A @ E.

    adj_ref : (tm, N_pad) bf16  streamed/pipelined row panel of A
    emb_ref : (N_pad, Dp) bf16  full E, VMEM-resident across the whole grid
    out_ref : (tm, Dp)    bf16  lane-dense output panel
    """
    out_ref[...] = jnp.dot(
        adj_ref[...], emb_ref[...], preferred_element_type=jnp.float32
    ).astype(out_ref.dtype)


def _spmm(adj_bf16: jax.Array, emb_bf16: jax.Array, *, tm: int) -> jax.Array:
    """A @ E with A: (N, N) bf16, E: (N, Dp) bf16 -> (N, Dp) bf16 (padded shapes)."""
    N, Dp = emb_bf16.shape
    assert adj_bf16.shape == (N, N)
    assert tm % 8 == 0 and Dp % 128 == 0 and N % tm == 0
    grid = (N // tm,)
    return pl.pallas_call(
        _row_panel_kernel,
        out_shape=jax.ShapeDtypeStruct((N, Dp), jnp.bfloat16),
        grid=grid,
        in_specs=[
            # A row panels: streamed, double-buffered by the Pallas pipeline.
            pl.BlockSpec((tm, N), lambda i: (i, 0)),
            # E: constant block index -> fetched once, stays resident in VMEM.
            pl.BlockSpec((N, Dp), lambda i: (0, 0)),
        ],
        out_specs=pl.BlockSpec((tm, Dp), lambda i: (i, 0)),
        compiler_params=pltpu.CompilerParams(
            dimension_semantics=("parallel",),
            vmem_limit_bytes=48 * 1024 * 1024,
        ),
    )(adj_bf16, emb_bf16)


def lightgcn_propagate(adj_bf16, emb0_f32, n_layers, *, tm):
    """mean([E, A@E, A@A@E, ...]) with n_layers propagation steps (padded shapes)."""
    acc = emb0_f32
    e = emb0_f32.astype(jnp.bfloat16)
    for _ in range(n_layers):                 # small static unroll (n_layers=3)
        e = _spmm(adj_bf16, e, tm=tm)         # bf16 in, bf16 out (f32 MXU acc)
        acc = acc + e.astype(jnp.float32)     # cheap elementwise glue (XLA)
    return acc * (1.0 / float(n_layers + 1))


def _score_kernel(u_ref, v_ref, out_ref):
    # sigmoid(U @ V.T) without materializing the transpose: contract last dims.
    s = lax.dot_general(u_ref[...], v_ref[...],
                        dimension_numbers=(((1,), (1,)), ((), ())),
                        preferred_element_type=jnp.float32)
    out_ref[...] = jax.nn.sigmoid(s)


def lightgcn_score(user_vec: jax.Array, item_vec: jax.Array) -> jax.Array:
    Bu, D = user_vec.shape
    Bi, D2 = item_vec.shape
    assert D == D2
    Dp = _round_up(D, 128)
    # Lane-dense padding: user rows -> mult of 8 (sublanes), item rows -> mult
    # of 128 (output lanes). Large tiles to cut V re-reads / per-step overhead.
    tu = min(512, _round_up(max(Bu, 8), 8))
    ti = min(2048, _round_up(max(Bi, 128), 128))
    Bu_p = _round_up(Bu, tu)
    Bi_p = _round_up(Bi, ti)
    # bf16 inputs halve HBM traffic and double MXU rate; accumulation stays f32.
    u = jnp.pad(user_vec.astype(jnp.bfloat16), ((0, Bu_p - Bu), (0, Dp - D)))
    v = jnp.pad(item_vec.astype(jnp.bfloat16), ((0, Bi_p - Bi), (0, Dp - D)))
    out = pl.pallas_call(
        _score_kernel,
        out_shape=jax.ShapeDtypeStruct((Bu_p, Bi_p), jnp.float32),
        grid=(Bu_p // tu, Bi_p // ti),
        in_specs=[
            pl.BlockSpec((tu, Dp), lambda i, j: (i, 0)),
            pl.BlockSpec((ti, Dp), lambda i, j: (j, 0)),
        ],
        out_specs=pl.BlockSpec((tu, ti), lambda i, j: (i, j)),
        compiler_params=pltpu.CompilerParams(
            dimension_semantics=("parallel", "parallel")),
    )(u, v)
    return out[:Bu, :Bi]


# ------------------------- Model glue (plain JAX / numpy) -------------------------

def build_norm_adj(user_item_matrix: np.ndarray, num_users: int, num_items: int) -> np.ndarray:
    """Dense reproduction of LightGCN.build_graph.

    NOTE: matches the PyTorch spec exactly: (row, col) = (user_idx, item_idx)
    are placed directly into the (N, N) matrix without offsetting the item
    columns by num_users (the reference module has the same convention)."""
    n = num_users + num_items
    adj = np.zeros((n, n), dtype=np.float64)
    adj[:num_users, :num_items] = user_item_matrix
    adj_t = adj.T
    gt = adj_t > adj
    adj = adj + adj_t * gt - adj * gt          # elementwise symmetrize (max)
    row_sum = adj.sum(axis=1)
    with np.errstate(divide="ignore"):
        d_inv = np.power(row_sum, -0.5)
    d_inv[np.isinf(d_inv)] = 0.0
    norm_adj = (d_inv[:, None] * adj) * d_inv[None, :]
    return norm_adj.astype(np.float32)


class LightGCNPallas:
    def __init__(self, hidden_size, num_users, num_items, user_item_matrix,
                 n_layers=3, alpha=0.1, key=None, tile_m=512):
        # tile_m=512 keeps the 2 in-flight (tm, N_pad) bf16 A panels + resident
        # E well under v7x's 64 MiB/TC VMEM; pass tile_m=1024 on v5e/v6e.
        assert tile_m % 128 == 0
        self.num_users = num_users
        self.num_items = num_items
        self.embedding_dim = hidden_size
        self.n_layers = n_layers
        self.alpha = alpha

        n = num_users + num_items
        n128 = _round_up(n, 128)
        tm = min(int(tile_m), n128)            # clamp to the (padded) problem
        self._tm = tm
        self._n = n
        self._n_pad = _round_up(n, tm)         # only a multiple of tm (tm % 128 == 0)
        self._d_pad = _round_up(hidden_size, 128)   # lane-dense embedding dim

        k_u, k_i = jax.random.split(key, 2)
        # nn.init.normal_(std=0.1)
        self.user_embedding = 0.1 * jax.random.normal(
            k_u, (num_users, hidden_size), dtype=jnp.float32)
        self.item_embedding = 0.1 * jax.random.normal(
            k_i, (num_items, hidden_size), dtype=jnp.float32)

        norm_np = build_norm_adj(np.asarray(user_item_matrix), num_users, num_items)
        self.norm_adj_f32 = jnp.asarray(norm_np)               # for the JAX reference
        adj_pad = np.zeros((self._n_pad, self._n_pad), dtype=np.float32)
        adj_pad[:n, :n] = norm_np
        # bf16 A halves HBM traffic of the mem-bound propagation; MXU acc is f32.
        self.norm_adj_bf16 = jnp.asarray(adj_pad, dtype=jnp.bfloat16)

    def get_embeddings(self):
        all_emb = jnp.concatenate([self.user_embedding, self.item_embedding], axis=0)
        emb_p = jnp.zeros((self._n_pad, self._d_pad), jnp.float32)
        emb_p = emb_p.at[: self._n, : self.embedding_dim].set(all_emb)
        out_p = lightgcn_propagate(self.norm_adj_bf16, emb_p, self.n_layers,
                                   tm=self._tm)
        return out_p[: self._n, : self.embedding_dim]

    def forward(self, user_tensor, item_tensor):
        all_embeddings = self.get_embeddings()
        user_embeddings = all_embeddings[: self.num_users]
        item_embeddings = all_embeddings[self.num_users:]
        user_vec = user_embeddings[user_tensor]    # gather (XLA glue)
        item_vec = item_embeddings[item_tensor]    # gather (XLA glue)
        return lightgcn_score(user_vec, item_vec)


# ------------------------- Reference (plain JAX, f32) -------------------------

def reference_forward(model: LightGCNPallas, user_tensor, item_tensor):
    all_emb = jnp.concatenate([model.user_embedding, model.item_embedding], axis=0)
    embs = [all_emb]
    e = all_emb
    for _ in range(model.n_layers):
        e = model.norm_adj_f32 @ e
        embs.append(e)
    mean_emb = jnp.mean(jnp.stack(embs, axis=1), axis=1)
    u = mean_emb[: model.num_users][user_tensor]
    v = mean_emb[model.num_users:][item_tensor]
    return jax.nn.sigmoid(u @ v.T)


# ------------------------- Main -------------------------

if __name__ == "__main__":
    key = jax.random.PRNGKey(0)
    k_emb, k_mask, k_rate, k_users, k_items = jax.random.split(key, 5)

    num_users = 64
    num_items = 192
    hidden_size = 32
    n_layers = 3

    # Deterministic synthetic user-item rating matrix (stand-in for ML1M ratings).
    mask = jax.random.bernoulli(k_mask, p=0.05, shape=(num_users, num_items))
    rate = jax.random.randint(k_rate, (num_users, num_items), 1, 6)
    user_item_matrix = np.asarray(mask, dtype=np.float64) * np.asarray(rate, dtype=np.float64)

    # Small tile for the tiny test graph so the row-panel grid is actually
    # exercised (N_pad=256, tm=128 -> grid=(2,)). Real-size graphs use the
    # default tile_m=512 (v7x-safe) or tile_m=1024 on v5e/v6e.
    model = LightGCNPallas(hidden_size, num_users, num_items, user_item_matrix,
                           n_layers=n_layers, key=k_emb, tile_m=128)

    user_tensor = jax.random.randint(k_users, (4,), 0, num_users)
    item_tensor = jax.random.randint(k_items, (8,), 0, num_items)

    out = model.forward(user_tensor, item_tensor)
    out = jax.block_until_ready(out)

    ref = jax.block_until_ready(reference_forward(model, user_tensor, item_tensor))
    # bf16 adjacency/embedding/score inputs (f32 accumulation) => looser tolerance.
    np.testing.assert_allclose(np.asarray(out), np.asarray(ref), rtol=2e-2, atol=2e-2)

    print("KERNEL_OK")
</pallas_src>

<mosaic_0001>
module attributes {stable_mosaic.version = 11 : i64} {
  func.func @_row_panel_kernel(%arg0: i32, %arg1: memref<128x256xbf16, #tpu.memory_space<vmem>>, %arg2: memref<256x128xbf16, #tpu.memory_space<vmem>>, %arg3: memref<128x128xbf16, #tpu.memory_space<vmem>>) attributes {dimension_semantics = [#tpu.dimension_semantics<parallel>], iteration_bounds = array<i64: 2>, scalar_prefetch = 0 : i64, scratch_operands = 0 : i64, tpu.core_type = #tpu.core_type<tc>, window_params = [{transform_indices = @transform_0, window_bounds = array<i64: 128, 256>}, {pipeline_mode = #tpu.pipeline_mode<synchronous>, transform_indices = @transform_1, window_bounds = array<i64: 256, 128>}, {transform_indices = @transform_2, window_bounds = array<i64: 128, 128>}]} {
    %c0 = arith.constant 0 : index
    %c0_0 = arith.constant 0 : index
    %0 = vector.load %arg1[%c0, %c0_0] : memref<128x256xbf16, #tpu.memory_space<vmem>>, vector<128x256xbf16>
    %c0_1 = arith.constant 0 : index
    %c0_2 = arith.constant 0 : index
    %1 = vector.load %arg2[%c0_1, %c0_2] : memref<256x128xbf16, #tpu.memory_space<vmem>>, vector<256x128xbf16>
    %cst = arith.constant dense<0.000000e+00> : vector<128x128xf32>
    %2 = tpu.matmul %0, %1, %cst {dimension_numbers = #tpu.dot_dimension_numbers<[1], [0], [0], [1], [0, 0, 1, 1], [], []>} : vector<128x256xbf16>, vector<256x128xbf16>, vector<128x128xf32> -> vector<128x128xf32>
    %3 = arith.truncf %2 : vector<128x128xf32> to vector<128x128xbf16>
    %c0_3 = arith.constant 0 : index
    %c0_4 = arith.constant 0 : index
    %4 = vector.load %arg3[%c0_3, %c0_4] : memref<128x128xbf16, #tpu.memory_space<vmem>>, vector<128x128xbf16>
    tpu.vector_store %arg3[%c0_3, %c0_4], %3 {strides = array<i32>} : memref<128x128xbf16, #tpu.memory_space<vmem>>, vector<128x128xbf16>,
    return
  }
  func.func @transform_0(%arg0: i32) -> (i32, i32) {
    %c0_i32 = arith.constant 0 : i32
    %c0_i32_0 = arith.constant 0 : i32
    return %arg0, %c0_i32 : i32, i32
  }
  func.func @transform_1(%arg0: i32) -> (i32, i32) {
    %c0_i32 = arith.constant 0 : i32
    %c0_i32_0 = arith.constant 0 : i32
    %c0_i32_1 = arith.constant 0 : i32
    return %c0_i32, %c0_i32_0 : i32, i32
  }
  func.func @transform_2(%arg0: i32) -> (i32, i32) {
    %c0_i32 = arith.constant 0 : i32
    %c0_i32_0 = arith.constant 0 : i32
    return %arg0, %c0_i32 : i32, i32
  }
}

</mosaic_0001>

<bundles_post_ra>
// kernel: tpu_custom_call.1
= control target key start
LH: loop header
LB: loop body
LE: loop exit
PB: predicated region body
PF: predicated region fallthrough
CT: control target
= control target key end

     0   :  { %7 = vsyncpa [#allocation3], 0  ;;  %s1378_s0 = inlined_call_operand.hbm [shape: bf16[256,256], index: 0, kind: input, shape index: {}]   ;;  %s1379_s1 = inlined_call_operand.hbm [shape: bf16[256,128], index: 1, kind: input, shape index: {}]   ;;  %s1380_s2 = inlined_call_operand.hbm [shape: bf16[256,128], index: 2, kind: output, shape index: {}]  }
   0x1   :  { %9 = vsyncpa [#allocation3 + $0x1], 0 }
   0x2   :  { %10 = vsyncpa [#allocation6], 0 }
   0x3   :  { %11 = vsyncpa [#allocation4], 0 }
   0x4   :  { %13 = vsyncpa [#allocation4 + $0x1], 0  ;;  %s1147_s9 = smov 0   ;;  %s1149_s10 = smov 0  }
   0x5   :  { %s1151_s11 = smov 0   ;;  %s1153_s12 = smov 0  }
   0x6 LB: > { %s1168_s13 = sadd.s32 4294967295, %s1121_s12   ;;  %s679_s14 = sadd.s32 4294967294, %s1121_s12   ;;  %s1121_s12 = sphi %s1153_s12, %s1400_s12   ;;  %s1117_s11 = sphi %s1151_s11, %s1399_s11   ;;  %s1113_s10 = sphi %s1149_s10, %s1398_s10   ;;  %s1109_s9 = sphi %s1147_s9, %s1397_s9  }
   0x7   : > { %p39_p0 = scmp.ne.s32.totalorder %s1113_s10, %s1109_s9  ;;  %p1381_p1 = scmp.eq.s32.totalorder %s1168_s13, 0 }
   0x8   : > { %p90_p3 = scmp.eq.s32.totalorder %s679_s14, 1  ;;  %p680_p5 = scmp.ge.s32.totalorder %s1121_s12, 1 }
   0x9   : > { %p1177_p4 = por %p1381_p1, %p39_p0  ;;  %p97_p7 = scmp.lt.s32.totalorder %s1121_s12, 3 }
   0xa   : > { %p1182_p6 = por %p90_p3, %p39_p0  ;;  %s1123_s18 = smov [#allocation5]  }
   0xb   : > { %s1384_s15 = scalar_select %p1177_p4, 1, 0 }
   0xc   : > { %s1385_s16 = scalar_select %p1182_p6, 1, 0 }
   0xd   : > { %p1187_p8 = pnand %p680_p5, %p97_p7  ;;  %s109_s19 = sshll.u32 %s1123_s18, 4  ;;  %s1191_s19 = int_to_ptr.vmem [resolvable:$true] %s109_s19 }
   0xe   : > { %s1203_s21 = sadd.s32 1, %s1121_s12   ;;  %s26_s22 = sadd.s32 1, %s1117_s11 }
   0xf   : > { %s1386_s17 = scalar_select %p1187_p8, 1, 0 }
  0x10   : > { %p898_p9 = pneg %p1187_p8  ;;  %s23_s23 = ssub.s32 %s1121_s12, %s1203_s21 }
  0x11   : > { %s993_s26 = scalar_lea.hbm %s1379_s1, 2048 }
  0x12   : > { %p1198_p11 = pnand %p898_p9, %p1381_p1  ;;  %p994_p12 = scmp.ne.s32.totalorder %s1379_s1, %s993_s26 }
  0x13   : > { %p1000_p5 = scmp.lt.u32.totalorder %s993_s26, %s1379_s1 }
  0x14   : > { %p995_p13 = pneg %p1198_p11 }
  0x16   : > { %p996_p0 = pnand %p995_p13, %p994_p12 }
  0x18   : > { %p997_p3 = pneg %p996_p0 }
  0x1a   : > { %p1002_p7 = pnand %p1000_p5, %p997_p3 }
  0x1c   : > { %1005 = shalt.err (!%p1002_p7)
}
  0x1d   : > { %s1006_s3 = scalar_lea.vmem %s1191_s19, 2048  ;;  %p1014_p2 = scmp.lt.s32.totalorder %s1191_s19, %s1191_s19 }
  0x1e   : > { %p1007_p9 = scmp.ne.s32.totalorder %s1191_s19, %s1006_s3  ;;  %p1015_p6 = scmp.lt.s32.totalorder %s1006_s3, %s1006_s3 }
  0x20   : > { %p1009_p10 = pnand %p1007_p9, %p995_p13  ;;  %p1016_p4 = por %p1015_p6, %p1014_p2 }
  0x22   : > { %p1010_p1 = pneg %p1009_p10 }
  0x24   : > { %p1017_p8 = pnand %p1016_p4, %p1010_p1 }
  0x26   : > { %1020 = shalt.err (!%p1017_p8)
}
  0x27   : > { %s1124_s4 = smov 64   ;;  %s1125_s5 = smov 4  }
  0x28   : > { %901 = dma.hbm_to_vmem [thread:$0]  (!%p1198_p11), %s1379_s1, 2048, %s1191_s19, [#allocation6], %s1124_s4, %s1124_s4, %s1125_s5  }
  0x29   : > { %p24_p2 = scmp.eq.s32.totalorder %s23_s23, 0  ;;  %p33_p1 = scmp.ne.s32.totalorder %s1117_s11, %s1113_s10 }
  0x2a   : > { %p34_p4 = scmp.eq.s32.totalorder %s1121_s12, 0  ;;  %p911_p6 = scmp.lt.s32.totalorder %s1121_s12, 2 }
  0x2b   : > { %s1234_s8 = scalar_select %p24_p2, %s1117_s11, %s26_s22  }
  0x2c   : > { %p35_p8 = por %p34_p4, %p33_p1  ;;  %p1388_p10 = scmp.eq.s32.totalorder %s1168_s13, 1 }
  0x2d   : > { %s123_s18 = sand.u32 1, %s1117_s11   ;;  %s745_s24 = sshll.u32 %s1121_s12, 11 }
  0x2e   : > { %p1238_p12 = por %p1388_p10, %p33_p1  ;;  %s683_s25 = sshll.u32 %s123_s18, 7 }
  0x2f   : > { %s1247_s27 = scalar_lea.hbm %s1378_s0, %s745_s24  ;;  %s127_s19 = scalar_lea.vmem [#allocation2], %s683_s25 }
  0x30   : > { %s135_s22 = sshll.u32 %s127_s19, 4  ;;  %p1249_p11 = pnand %p911_p6, %p35_p8  ;;  %s1253_s22 = int_to_ptr.vmem [resolvable:$true] %s135_s22 }
  0x31   : > { %s1255_s28 = scalar_lea.sflag [#allocation3], %s123_s18  ;;  %s1021_s29 = scalar_lea.hbm %s1247_s27, 2048 }
  0x32   : > { %p1022_p13 = scmp.ne.s32.totalorder %s1247_s27, %s1021_s29  ;;  %p1023_p0 = pneg %p1249_p11 }
  0x33   : > { %s1026_s4 = scalar_lea.hbm %s1378_s0, 4096  ;;  %p1027_p7 = scmp.lt.u32.totalorder %s1247_s27, %s1378_s0 }
  0x34   : > { %p1024_p3 = pnand %p1023_p0, %p1022_p13  ;;  %p1028_p9 = scmp.lt.u32.totalorder %s1026_s4, %s1021_s29 }
  0x35   : > { %p1030_p1 = scmp.lt.u32.totalorder %s1021_s29, %s1247_s27 }
  0x36   : > { %p1025_p5 = pneg %p1024_p3  ;;  %p1029_p2 = por %p1028_p9, %p1027_p7 }
  0x38   : > { %p1031_p4 = por %p1030_p1, %p1029_p2 }
  0x3a   : > { %p1032_p6 = pnand %p1031_p4, %p1025_p5 }
  0x3c   : > { %1035 = shalt.err (!%p1032_p6)
}
  0x3d   : > { %s1036_s7 = scalar_lea.vmem %s1253_s22, 2048  ;;  %s1126_s18 = smov [#allocation2]  }
  0x3e   : > { %p1037_p8 = scmp.ne.s32.totalorder %s1253_s22, %s1036_s7  ;;  %s1041_s24 = sshll.u32 %s1126_s18, 4  ;;  %s1042_s24 = int_to_ptr.vmem [resolvable:$false] %s1041_s24 }
  0x3f   : > { %s1043_s25 = scalar_lea.vmem %s1042_s24, 4096  ;;  %p1044_p3 = scmp.lt.s32.totalorder %s1253_s22, %s1042_s24 }
  0x40   : > { %p1039_p10 = pnand %p1037_p8, %p1023_p0  ;;  %p1045_p7 = scmp.lt.s32.totalorder %s1043_s25, %s1036_s7 }
  0x42   : > { %p1040_p13 = pneg %p1039_p10  ;;  %p1046_p9 = por %p1045_p7, %p1044_p3 }
  0x44   : > { %p1047_p2 = pnand %p1046_p9, %p1040_p13 }
  0x46   : > { %1050 = shalt.err (!%p1047_p2)
}
  0x47   : > { %s1127_s20 = smov 128   ;;  %s1128_s26 = smov 8  }
  0x48   : > { %905 = dma.hbm_to_vmem [thread:$0]  (!%p1249_p11), %s1247_s27, 2048, %s1253_s22, %s1255_s28, %s1127_s20, %s1127_s20, %s1128_s26  }
  0x49   : > { %p1391_p0 = scmp.ne.s32.totalorder %s1386_s17, 0 }
  0x4a   : > { %s1286_s19 = sand.u32 (!%p1391_p0), 1, %s1113_s10   ;;  %p1392_p5 = scmp.ne.s32.totalorder (!%p1391_p0), %s1384_s15, 0 }
  0x4b   : > { %147 = sbr.rel (%p1391_p0) target bundleno = 377 (0x179), region = 28  ;;  %s688_s29 = sshll.u32 (!%p1391_p0), %s1286_s19, 7 }
  0x4c   : > { %s150_s30 = scalar_lea.sflag (!%p1391_p0), [#allocation3], %s1286_s19  ;;  %s1290_s3 = scalar_lea.vmem (!%p1391_p0), [#allocation2], %s688_s29 }
  0x52   : > { %1096 = dma.done.wait (%p1392_p5), %s150_s30, 2048  }
  0x53   : > { %1098 = vsyncadd (%p1392_p5), %s150_s30, 4294965248  ;;  %p1393_p11 = scmp.eq.s32.totalorder %s1168_s13, 0 }
  0x55   : > { %1100 = dma.done.wait (%p1393_p11), [#allocation6], 2048   ;;  %p1394_p1 = pmov %p1393_p11 }
  0x56   : > { %v953_v0 = vld [vmem:[#allocation5 + $0x40] sm:$0xff]   ;;  %v955_v2 = vld [vmem:[#allocation5 + $0x48] sm:$0xff]   ;;  %v957_v4 = vld [vmem:[#allocation5 + $0x50] sm:$0xff]   ;;  %s690_s15 = sshll.u32 %s1286_s19, 6  ;;  %s762_s22 = sshll.u32 %s1168_s13, 10 }
  0x57   : > { %1102 = vsyncadd (%p1394_p1), [#allocation6], 4294965248  ;;  %v954_v1 = vld [vmem:[#allocation5] sm:$0xff]   ;;  %810 = vmatprep.subr.bf16.mxu0 %v953_v0  ;;  %874 = vmatprep.subr.bf16.mxu1 %v953_v0  ;;  %v956_v3 = vld [vmem:[#allocation5 + $0x8] sm:$0xff]   ;;  %s1317_s17 = scalar_lea.vmem [#allocation7], %s690_s15  ;;  %s1332_s4 = scalar_lea.hbm %s1380_s2, %s762_s22 }
  0x58   : > { %811 = vmatpush3.bf16.msra.mxu0 %v954_v1  ;;  %882 = vmatpush3.bf16.msra.mxu1 %v954_v1  ;;  %v958_v5 = vld [vmem:[#allocation5 + $0x10] sm:$0xff]   ;;  %v959_v6 = vld [vmem:[#allocation5 + $0x58] sm:$0xff]   ;;  %v961_v8 = vld [vmem:[#allocation5 + $0x60] sm:$0xff]   ;;  %s596_s27 = sshll.u32 %s1317_s17, 4  ;;  %s583_s5 = scalar_lea.sflag [#allocation4], %s1286_s19  ;;  %s1327_s27 = int_to_ptr.vmem [resolvable:$true] %s596_s27 }
  0x59   : > { %812 = vmatprep.subr.bf16.mxu0 %v955_v2  ;;  %875 = vmatprep.subr.bf16.mxu1 %v955_v2  ;;  %v960_v7 = vld [vmem:[#allocation5 + $0x18] sm:$0xff]   ;;  %v962_v9 = vld [vmem:[#allocation5 + $0x20] sm:$0xff]   ;;  %v963_v10 = vld [vmem:[#allocation5 + $0x68] sm:$0xff]   ;;  %s1051_s13 = scalar_lea.vmem %s1327_s27, 1024  ;;  %s1129_s6 = smov [#allocation7]  }
  0x5a   : > { %v971_v11 = vld [vmem:[%s1290_s3 + $0x4] ss:$8 sps:$4 sm:$0xff]   ;;  %v965_v14 = vld [vmem:[#allocation5 + $0x70] sm:$0xff]   ;;  %v967_v16 = vld [vmem:[#allocation5 + $0x78] sm:$0xff]   ;;  %p1052_p4 = scmp.ne.s32.totalorder %s1327_s27, %s1051_s13  ;;  %s1055_s7 = sshll.u32 %s1129_s6, 4  ;;  %s1056_s7 = int_to_ptr.vmem [resolvable:$false] %s1055_s7 }
  0x5b   : > { %v974_v12 = vld [vmem:[%s1290_s3 + $0x44] ss:$8 sps:$4 sm:$0xff]   ;;  %437 = vmatprep.mubr.bf16.mxu0 %v971_v11  ;;  %v966_v15 = vld [vmem:[#allocation5 + $0x30] sm:$0xff]   ;;  %v968_v17 = vld [vmem:[#allocation5 + $0x38] sm:$0xff]   ;;  %s1057_s18 = scalar_lea.vmem %s1056_s7, 2048  ;;  %p1058_p10 = scmp.lt.s32.totalorder %s1327_s27, %s1056_s7 }
  0x5c   : > { %813 = vmatpush3.bf16.msra.mxu0 %v956_v3  ;;  %883 = vmatpush3.bf16.msra.mxu1 %v956_v3  ;;  %v964_v13 = vld [vmem:[#allocation5 + $0x28] sm:$0xff]   ;;  %v975_v20 = vld [vmem:[%s1290_s3 + $0x14] ss:$8 sps:$4 sm:$0xff]   ;;  %v979_v22 = vld [vmem:[%s1290_s3 + $0x10] ss:$8 sps:$4 sm:$0xff]   ;;  %p1053_p6 = pnand %p1052_p4, %p1238_p12  ;;  %p1059_p13 = scmp.lt.s32.totalorder %s1057_s18, %s1051_s13 }
  0x5d   : > { %814 = vmatprep.subr.bf16.mxu0 %v957_v4  ;;  %876 = vmatprep.subr.bf16.mxu1 %v957_v4  ;;  %v969_v18 = vld [vmem:[%s1290_s3] ss:$8 sps:$4 sm:$0xff]   ;;  %v977_v21 = vld [vmem:[%s1290_s3 + $0x54] ss:$8 sps:$4 sm:$0xff]   ;;  %v980_v23 = vld [vmem:[%s1290_s3 + $0x50] ss:$8 sps:$4 sm:$0xff]  }
  0x5e   : > { %469 = vmatprep.mubr.bf16.mxu1 %v974_v12  ;;  %v972_v19 = vld [vmem:[%s1290_s3 + $0x40] ss:$8 sps:$4 sm:$0xff]   ;;  %v981_v24 = vld [vmem:[%s1290_s3 + $0x24] ss:$8 sps:$4 sm:$0xff]   ;;  %v987_v28 = vld [vmem:[%s1290_s3 + $0x34] ss:$8 sps:$4 sm:$0xff]   ;;  %p1054_p8 = pneg %p1053_p6  ;;  %p1060_p3 = por %p1059_p13, %p1058_p10 }
  0x5f   : > { %v983_v25 = vld [vmem:[%s1290_s3 + $0x64] ss:$8 sps:$4 sm:$0xff]   ;;  %v985_v26 = vld [vmem:[%s1290_s3 + $0x20] ss:$8 sps:$4 sm:$0xff]   ;;  %v989_v29 = vld [vmem:[%s1290_s3 + $0x74] ss:$8 sps:$4 sm:$0xff]  }
  0x60   : > { %815 = vmatpush3.bf16.msra.mxu0 %v958_v5  ;;  %884 = vmatpush3.bf16.msra.mxu1 %v958_v5  ;;  %v986_v27 = vld [vmem:[%s1290_s3 + $0x60] ss:$8 sps:$4 sm:$0xff]   ;;  %v991_v30 = vld [vmem:[%s1290_s3 + $0x30] ss:$8 sps:$4 sm:$0xff]   ;;  %p1061_p7 = pnand %p1060_p3, %p1054_p8 }
  0x61   : > { %816 = vmatprep.subr.bf16.mxu0 %v959_v6  ;;  %877 = vmatprep.subr.bf16.mxu1 %v959_v6  ;;  %v992_v31 = vld [vmem:[%s1290_s3 + $0x70] ss:$8 sps:$4 sm:$0xff]  }
  0x64   : > { %817 = vmatpush3.bf16.msra.mxu0 %v960_v7  ;;  %885 = vmatpush3.bf16.msra.mxu1 %v960_v7 }
  0x65   : > { %818 = vmatprep.subr.bf16.mxu0 %v961_v8  ;;  %878 = vmatprep.subr.bf16.mxu1 %v961_v8 }
  0x68   : > { %819 = vmatpush3.bf16.msra.mxu0 %v962_v9  ;;  %886 = vmatpush3.bf16.msra.mxu1 %v962_v9 }
  0x69   : > { %820 = vmatprep.subr.bf16.mxu0 %v963_v10  ;;  %879 = vmatprep.subr.bf16.mxu1 %v963_v10 }
  0x6c   : > { %821 = vmatpush3.bf16.msra.mxu0 %v964_v13  ;;  %887 = vmatpush3.bf16.msra.mxu1 %v964_v13 }
  0x6d   : > { %822 = vmatprep.subr.bf16.mxu0 %v965_v14  ;;  %880 = vmatprep.subr.bf16.mxu1 %v965_v14 }
  0x70   : > { %823 = vmatpush3.bf16.msra.mxu0 %v966_v15  ;;  %888 = vmatpush3.bf16.msra.mxu1 %v966_v15 }
  0x71   : > { %824 = vmatprep.subr.bf16.mxu0 %v967_v16  ;;  %881 = vmatprep.subr.bf16.mxu1 %v967_v16 }
  0x74   : > { %825 = vmatpush3.bf16.msra.mxu0 %v968_v17  ;;  %889 = vmatpush3.bf16.msra.mxu1 %v968_v17 }
  0x77   : > { %438 = vmatmul.mubr.bf16.vlgmr.msra.gmra.mrb[0].mxu0 %v969_v18  ;;  %470 = vmatmul.mubr.bf16.vlgmr.msra.gmra.mrb[0].mxu1 %v972_v19 }
  0x78   : > { %445 = vmatprep.mubr.bf16.mxu0 %v975_v20  ;;  %477 = vmatprep.mubr.bf16.mxu1 %v977_v21 }
  0x7f   : > { %446 = vmatmul.mubr.bf16.gmra.mrb[4].mxu0 %v979_v22  ;;  %478 = vmatmul.mubr.bf16.gmra.mrb[4].mxu1 %v980_v23 }
  0x80   : > { %453 = vmatprep.mubr.bf16.mxu0 %v981_v24  ;;  %485 = vmatprep.mubr.bf16.mxu1 %v983_v25 }
  0x87   : > { %454 = vmatmul.mubr.bf16.gmra.mrb[8].mxu0 %v985_v26  ;;  %486 = vmatmul.mubr.bf16.gmra.mrb[8].mxu1 %v986_v27 }
  0x88   : > { %461 = vmatprep.mubr.bf16.mxu0 %v987_v28  ;;  %493 = vmatprep.mubr.bf16.mxu1 %v989_v29 }
  0x8f   : > { %462 = vmatmul.mubr.bf16.gmra.mrb[12].mxu0 %v991_v30  ;;  %494 = vmatmul.mubr.bf16.gmra.mrb[12].mxu1 %v992_v31 }
 0x14a   : > { %v826_v32 = vpop.f32.mrb[0].mxu0  ;;  %v850_v33 = vpop.f32.mrb[0].mxu1 }
 0x14b   : > { %v827_v34 = vpop.f32.mrb[1].mxu0  ;;  %v851_v35 = vpop.f32.mrb[1].mxu1 }
 0x14c   : > { %v828_v36 = vadd.f32 %v827_v34, %v826_v32  ;;  %v852_v37 = vadd.f32 %v851_v35, %v850_v33  ;;  %v829_v38 = vpop.f32.mrb[2].mxu0  ;;  %v853_v39 = vpop.f32.mrb[2].mxu1 }
 0x14d   : > { %v830_v40 = vpop.f32.mrb[3].mxu0  ;;  %v854_v41 = vpop.f32.mrb[3].mxu1 }
 0x14e   : > { %v831_v42 = vadd.f32 %v830_v40, %v829_v38  ;;  %v855_v43 = vadd.f32 %v854_v41, %v853_v39 }
 0x150   : > { %v766_v44 = vpack.c.bf16 %v831_v42, %v828_v36  ;;  %v786_v45 = vpack.c.bf16 %v855_v43, %v852_v37 }
 0x152   : > { %767 = vst [vmem:[%s1317_s17] sm:$0xff] %v766_v44   ;;  %806 = vst [vmem:[%s1317_s17 + $0x20] sm:$0xff] %v786_v45   ;;  %v832_v46 = vpop.f32.mrb[4].mxu0  ;;  %v856_v47 = vpop.f32.mrb[4].mxu1 }
 0x153   : > { %v833_v48 = vpop.f32.mrb[5].mxu0  ;;  %v857_v49 = vpop.f32.mrb[5].mxu1 }
 0x154   : > { %v834_v50 = vadd.f32 %v833_v48, %v832_v46  ;;  %v858_v51 = vadd.f32 %v857_v49, %v856_v47  ;;  %v835_v52 = vpop.f32.mrb[6].mxu0  ;;  %v859_v53 = vpop.f32.mrb[6].mxu1 }
 0x155   : > { %v836_v54 = vpop.f32.mrb[7].mxu0  ;;  %v860_v55 = vpop.f32.mrb[7].mxu1 }
 0x156   : > { %v837_v56 = vadd.f32 %v836_v54, %v835_v52  ;;  %v861_v57 = vadd.f32 %v860_v55, %v859_v53 }
 0x158   : > { %v771_v58 = vpack.c.bf16 %v837_v56, %v834_v50  ;;  %v791_v59 = vpack.c.bf16 %v861_v57, %v858_v51 }
 0x15a   : > { %803 = vst [vmem:[%s1317_s17 + $0x8] sm:$0xff] %v771_v58   ;;  %807 = vst [vmem:[%s1317_s17 + $0x28] sm:$0xff] %v791_v59   ;;  %v838_v60 = vpop.f32.mrb[8].mxu0  ;;  %v862_v61 = vpop.f32.mrb[8].mxu1 }
 0x15b   : > { %v839_v62 = vpop.f32.mrb[9].mxu0  ;;  %v863_v63 = vpop.f32.mrb[9].mxu1 }
 0x15c   : > { %v840_v0 = vadd.f32 %v839_v62, %v838_v60  ;;  %v864_v1 = vadd.f32 %v863_v63, %v862_v61  ;;  %v841_v2 = vpop.f32.mrb[10].mxu0  ;;  %v865_v3 = vpop.f32.mrb[10].mxu1 }
 0x15d   : > { %v842_v4 = vpop.f32.mrb[11].mxu0  ;;  %v866_v5 = vpop.f32.mrb[11].mxu1 }
 0x15e   : > { %v843_v6 = vadd.f32 %v842_v4, %v841_v2  ;;  %v867_v7 = vadd.f32 %v866_v5, %v865_v3 }
 0x160   : > { %v776_v8 = vpack.c.bf16 %v843_v6, %v840_v0  ;;  %v796_v9 = vpack.c.bf16 %v867_v7, %v864_v1 }
 0x162   : > { %804 = vst [vmem:[%s1317_s17 + $0x10] sm:$0xff] %v776_v8   ;;  %808 = vst [vmem:[%s1317_s17 + $0x30] sm:$0xff] %v796_v9   ;;  %v844_v10 = vpop.f32.mrb[12].mxu0  ;;  %v868_v11 = vpop.f32.mrb[12].mxu1 }
 0x163   : > { %v845_v12 = vpop.f32.mrb[13].mxu0  ;;  %v869_v13 = vpop.f32.mrb[13].mxu1 }
 0x164   : > { %v846_v14 = vadd.f32 %v845_v12, %v844_v10  ;;  %v870_v15 = vadd.f32 %v869_v13, %v868_v11  ;;  %v847_v16 = vpop.f32.mrb[14].mxu0  ;;  %v871_v17 = vpop.f32.mrb[14].mxu1 }
 0x165   : > { %v848_v18 = vpop.f32.mrb[15].mxu0  ;;  %v872_v19 = vpop.f32.mrb[15].mxu1 }
 0x166   : > { %v849_v20 = vadd.f32 %v848_v18, %v847_v16  ;;  %v873_v21 = vadd.f32 %v872_v19, %v871_v17 }
 0x168   : > { %v781_v22 = vpack.c.bf16 %v849_v20, %v846_v14  ;;  %v801_v23 = vpack.c.bf16 %v873_v21, %v870_v15 }
 0x16a   : > { %805 = vst [vmem:[%s1317_s17 + $0x18] sm:$0xff] %v781_v22   ;;  %809 = vst [vmem:[%s1317_s17 + $0x38] sm:$0xff] %v801_v23  }
 0x16b   : > { %1064 = shalt.err (!%p1061_p7)
}
 0x16c   : > { %s1065_s24 = scalar_lea.hbm %s1332_s4, 1024  ;;  %s1069_s26 = scalar_lea.hbm %s1380_s2, 2048 }
 0x16d   : > { %p1066_p9 = scmp.ne.s32.totalorder %s1332_s4, %s1065_s24  ;;  %p1070_p5 = scmp.lt.u32.totalorder %s1332_s4, %s1380_s2 }
 0x16e   : > { %p1071_p11 = scmp.lt.u32.totalorder %s1069_s26, %s1065_s24  ;;  %p1073_p4 = scmp.lt.u32.totalorder %s1065_s24, %s1332_s4 }
 0x16f   : > { %p1067_p2 = pnand %p1066_p9, %p1238_p12 }
 0x170   : > { %p1072_p1 = por %p1071_p11, %p1070_p5 }
 0x171   : > { %p1068_p0 = pneg %p1067_p2 }
 0x172   : > { %p1074_p6 = por %p1073_p4, %p1072_p1 }
 0x174   : > { %p1075_p8 = pnand %p1074_p6, %p1068_p0 }
 0x176   : > { %1078 = shalt.err (!%p1075_p8)
}
 0x177   : > { %s1130_s3 = smov 64   ;;  %s1131_s15 = smov 4  }
 0x178   : > { %896 = dma.vmem_to_hbm [thread:$0]  (%p1238_p12), %s1327_s27, 1024, %s1332_s4, %s583_s5, %s1130_s3, %s1130_s3, %s1131_s15  }
 0x179 PF: > { %s611_s17 = sand.u32 1, %s1109_s9   ;;  %p1395_p10 = scmp.ne.s32.totalorder %s1385_s16, 0 }
 0x17a   : > { %p1396_p13 = scmp.ge.s32.totalorder %s1121_s12, 2  ;;  %s612_s22 = scalar_lea.sflag [#allocation4], %s611_s17 }
 0x17c   : > { %p907_p3 = pnand %p1396_p13, %p1395_p10 }
 0x17e   : > { %1104 = dma.done.wait (!%p907_p3), %s612_s22, 1024  }
 0x17f   : > { %1106 = vsyncadd (!%p907_p3), %s612_s22, 4294966272  ;;  %p16_p7 = scmp.ge.s32.totalorder %s1203_s21, 4   ;;  %s1397_s9 = smov %s1113_s10 }
 0x180   : > { %s1398_s10 = smov %s1117_s11  ;;  %s1399_s11 = smov %s1234_s8 }
 0x181   : > { %s1400_s12 = smov %s1203_s21  ;;  %18 = sbr.rel (!%p16_p7) target bundleno = 6 (0x6), region = 77 }
 0x188   :  { %617 = vsyncpa [#allocation3], 1 }
 0x189   :  { %619 = vsyncpa [#allocation3 + $0x1], 1 }
 0x18a   :  { %620 = vsyncpa [#allocation6], 1 }
 0x18b   :  { %621 = vsyncpa [#allocation4], 1 }
 0x18c   :  { %623 = vsyncpa [#allocation4 + $0x1], 1 }

</bundles_post_ra>
